<compile_context>
chip_gen: v7x
topology: tpu7x:2x2x1
jax: 0.10.0
libtpu: 0.0.40
codegen_flags: <defaults>
</compile_context>

<pallas_src>
import numpy as np
import jax
import jax.numpy as jnp
from jax import lax
from jax.experimental import pallas as pl
from jax.experimental.pallas import tpu as pltpu


def round_up(x, m):
    return ((x + m - 1) // m) * m


def pick_tile(n, candidates=(1024, 512, 256, 128)):
    for c in candidates:
        if n % c == 0:
            return c
    return n  # block equals full dim -> always legal


# -----------------------------------------------------------------------------
# Kernel 1: per-pixel preprocessing (channels-first, pixels on lanes)
# -----------------------------------------------------------------------------
def preprocess_kernel(pred_ref, wl_ref, feat_ref,
                      prob_ref, argmax_ref, wprob_ref, featn_ref):
    # blocks: pred/wl (1, C, TP), feat (1, D, TP); reductions over axis 0.
    logits = pred_ref[0].astype(jnp.float32)                      # (C, TP)
    m = jnp.max(logits, axis=0, keepdims=True)                    # (1, TP)
    e = jnp.exp(logits - m)
    prob_ref[0] = (e / jnp.sum(e, axis=0, keepdims=True)).astype(prob_ref.dtype)

    # argmax over channels (first occurrence of the max)
    cidx = lax.broadcasted_iota(jnp.int32, logits.shape, 0)
    argmax_ref[0] = jnp.min(jnp.where(logits == m, cidx, 2 ** 30),
                            axis=0, keepdims=True)

    wl = wl_ref[0].astype(jnp.float32)                            # (C, TP)
    mw = jnp.max(wl, axis=0, keepdims=True)
    ew = jnp.exp(wl - mw)
    wprob_ref[0] = (ew / jnp.sum(ew, axis=0, keepdims=True)).astype(wprob_ref.dtype)

    f = feat_ref[0].astype(jnp.float32)                           # (D, TP)
    nrm = jnp.sqrt(jnp.sum(f * f, axis=0, keepdims=True))
    featn_ref[0] = (f / jnp.maximum(nrm, 1e-12)).astype(featn_ref.dtype)


def preprocess(pred3, wl3, feat3, tp=None):
    B, C, HW = pred3.shape
    D = feat3.shape[1]
    if tp is None:
        tp = pick_tile(HW)
    assert HW % tp == 0
    grid = (B, HW // tp)
    return pl.pallas_call(
        preprocess_kernel,
        out_shape=(jax.ShapeDtypeStruct((B, C, HW), jnp.float32),
                   jax.ShapeDtypeStruct((B, 1, HW), jnp.int32),
                   jax.ShapeDtypeStruct((B, C, HW), jnp.float32),
                   jax.ShapeDtypeStruct((B, D, HW), jnp.float32)),
        grid=grid,
        in_specs=[pl.BlockSpec((1, C, tp), lambda b, i: (b, 0, i)),
                  pl.BlockSpec((1, C, tp), lambda b, i: (b, 0, i)),
                  pl.BlockSpec((1, D, tp), lambda b, i: (b, 0, i))],
        out_specs=(pl.BlockSpec((1, C, tp), lambda b, i: (b, 0, i)),
                   pl.BlockSpec((1, 1, tp), lambda b, i: (b, 0, i)),
                   pl.BlockSpec((1, C, tp), lambda b, i: (b, 0, i)),
                   pl.BlockSpec((1, D, tp), lambda b, i: (b, 0, i))),
        compiler_params=pltpu.CompilerParams(
            dimension_semantics=("parallel", "parallel")),
    )(pred3, wl3, feat3)


# -----------------------------------------------------------------------------
# Kernel 2: column-blocked supervised-contrastive loss
# -----------------------------------------------------------------------------
def make_contrastive_kernel(temperature, base_temperature, n_valid, tr, tc):
    inv_t = float(1.0 / temperature)            # python floats: not captured consts
    scale = float(-(temperature / base_temperature))
    n_valid = int(n_valid)

    def kernel(fr_ref, pr_ref, ohr_ref, fc_ref, pc_ref, ohc_ref,
               cls_sum_ref, cls_cnt_ref, m_sc, a_sc, pd_sc, w_sc, l_sc):
        i = pl.program_id(0)
        j = pl.program_id(1)

        @pl.when(j == 0)
        def _():
            m_sc[...] = jnp.full_like(m_sc, -jnp.inf)
            a_sc[...] = jnp.zeros_like(a_sc)
            pd_sc[...] = jnp.zeros_like(pd_sc)
            w_sc[...] = jnp.zeros_like(w_sc)
            l_sc[...] = jnp.zeros_like(l_sc)

        f_r = fr_ref[...]            # (TR, D)  L2-normalized rows, pad rows zero
        f_c = fc_ref[...]            # (TC, D)
        p_r = pr_ref[...]            # (TR, Cp) softmax(weight_logit), pad rows zero
        p_c = pc_ref[...]            # (TC, Cp)
        oh_r = ohr_ref[...]          # (TR, Cp) one-hot labels, pad rows zero
        oh_c = ohc_ref[...]          # (TC, Cp)

        dn = (((1,), (1,)), ((), ()))          # contract last dims: A @ B.T
        dot = lax.dot_general(f_r, f_c, dn,
                              preferred_element_type=jnp.float32) * inv_t   # (TR,TC)
        g_rc = lax.dot_general(p_r, oh_c, dn,
                               preferred_element_type=jnp.float32)  # prob[i, label[j]]
        g_cr = lax.dot_general(oh_r, p_c, dn,
                               preferred_element_type=jnp.float32)  # prob[j, label[i]]
        label_map = lax.dot_general(oh_r, oh_c, dn,
                                    preferred_element_type=jnp.float32)

        grow = i * tr + lax.broadcasted_iota(jnp.int32, (tr, tc), 0)
        gcol = j * tc + lax.broadcasted_iota(jnp.int32, (tr, tc), 1)
        off_diag = grow != gcol
        keep = off_diag & (grow < n_valid) & (gcol < n_valid)

        # probability_mask = 1 - 0.5*(p[i,lab[j]] + p[j,lab[i]]), off-diag & valid
        pm = jnp.where(keep, 1.0 - 0.5 * (g_rc + g_cr), 0.0)
        label_map = jnp.where(off_diag, label_map, 0.0)
        pos_w = pm * label_map

        # online row-max (diag = 1/T dominates, so pad cols with dot=0 are inert)
        blk_max = jnp.max(dot, axis=1, keepdims=True)
        m_new = jnp.maximum(m_sc[...], blk_max)
        alpha = jnp.exp(m_sc[...] - m_new)
        a_sc[...] = a_sc[...] * alpha + jnp.sum(jnp.exp(dot - m_new) * pm,
                                                axis=1, keepdims=True)
        m_sc[...] = m_new
        pd_sc[...] = pd_sc[...] + jnp.sum(pos_w * dot, axis=1, keepdims=True)
        w_sc[...] = w_sc[...] + jnp.sum(pos_w, axis=1, keepdims=True)
        l_sc[...] = l_sc[...] + jnp.sum(label_map, axis=1, keepdims=True)

        @pl.when(j == pl.num_programs(1) - 1)
        def _():
            # sum_j pos_w*log_prob = sum(pos_w*dot) - W*(m + log Z)
            log_z = jnp.log(a_sc[...] + 1e-16)
            mean_log_prob_pos = (pd_sc[...] - w_sc[...] * (m_sc[...] + log_z)) \
                                / (l_sc[...] + 1e-16)
            loss_vec = scale * mean_log_prob_pos                  # (TR, 1)
            # per-class partial sums / counts for scatter_mean (finished outside)
            cls_sum_ref[0] = jnp.sum(loss_vec * oh_r, axis=0, keepdims=True)
            cls_cnt_ref[0] = jnp.sum(oh_r, axis=0, keepdims=True)

    return kernel


def contrastive(feat_p, prob_p, onehot_p, *, n_valid, temperature,
                base_temperature, tr=256, tc=256):
    Np, D = feat_p.shape
    Cp = prob_p.shape[1]
    assert Np % tr == 0 and Np % tc == 0
    R, Cb = Np // tr, Np // tc
    kern = make_contrastive_kernel(temperature, base_temperature, n_valid, tr, tc)
    cls_sum, cls_cnt = pl.pallas_call(
        kern,
        out_shape=(jax.ShapeDtypeStruct((R, 1, Cp), jnp.float32),
                   jax.ShapeDtypeStruct((R, 1, Cp), jnp.float32)),
        grid=(R, Cb),
        in_specs=[pl.BlockSpec((tr, D), lambda i, j: (i, 0)),
                  pl.BlockSpec((tr, Cp), lambda i, j: (i, 0)),
                  pl.BlockSpec((tr, Cp), lambda i, j: (i, 0)),
                  pl.BlockSpec((tc, D), lambda i, j: (j, 0)),
                  pl.BlockSpec((tc, Cp), lambda i, j: (j, 0)),
                  pl.BlockSpec((tc, Cp), lambda i, j: (j, 0))],
        out_specs=(pl.BlockSpec((1, 1, Cp), lambda i, j: (i, 0, 0)),
                   pl.BlockSpec((1, 1, Cp), lambda i, j: (i, 0, 0))),
        scratch_shapes=[pltpu.VMEM((tr, 1), jnp.float32)] * 5,
        compiler_params=pltpu.CompilerParams(
            dimension_semantics=("parallel", "arbitrary")),
    )(feat_p, prob_p, onehot_p, feat_p, prob_p, onehot_p)
    return cls_sum, cls_cnt


# -----------------------------------------------------------------------------
# Host-side glue: nearest resize + hard sample mining (dynamic shapes)
# -----------------------------------------------------------------------------
def nearest_resize_labels(label, H, W):
    # PyTorch F.interpolate(mode='nearest'): src = floor(dst * in / out)
    B, H0, W0 = label.shape
    ih = (jnp.arange(H) * H0) // H
    iw = (jnp.arange(W) * W0) // W
    return label[:, ih][:, :, iw]


def hard_sample_mining_indices(pred_id, label, prob, *, max_sample, threshold,
                               ignore_index, fp, hard_sort, easy_sort, rng):
    """pred_id, label: (B, HW) int; prob: (B, C, HW) or None (only for sorting).
    Returns (batch_idx, pixel_idx, labels) numpy arrays, or (None, None, None)."""
    B = label.shape[0]
    hard_sample_classes = []
    total = 0
    for i in range(B):
        lab = label[i]
        cls = [int(c) for c in np.unique(lab) if int(c) != ignore_index]
        cls = [c for c in cls if int((lab == c).sum()) > threshold]
        hard_sample_classes.append(cls)
        total += len(cls)
    if total == 0:
        return None, None, None
    n_view = max_sample // total
    n_view = min(n_view, threshold)
    b_list, p_list, l_list = [], [], []
    for i in range(B):
        lab, pred = label[i], pred_id[i]
        for c in hard_sample_classes[i]:
            if fp:
                hard = np.nonzero((lab != c) & (pred == c))[0]
            else:
                hard = np.nonzero((lab == c) & (pred != c))[0]
            easy = np.nonzero((lab == c) & (pred == c))[0]
            nh, ne = hard.shape[0], easy.shape[0]
            if nh >= n_view / 2 and ne >= n_view / 2:
                nhk = n_view // 2
                nek = n_view - nhk
            elif nh >= n_view / 2:
                nek = ne
                nhk = n_view - nek
            elif ne >= n_view / 2:
                nhk = nh
                nek = n_view - nhk
            else:
                nhk = nh
                nek = ne
            if hard_sort:
                order = np.argsort(-prob[i, c, hard], kind="stable")
                hard = hard[order[:nhk]]
            else:
                hard = hard[rng.permutation(nh)[:nhk]]
            if easy_sort:
                order = np.argsort(prob[i, c, easy], kind="stable")
                easy = easy[order[:nek]]
            else:
                easy = easy[rng.permutation(ne)[:nek]]
            idx = np.concatenate([hard, easy], axis=0).astype(np.int64)
            b_list.append(np.full(idx.shape, i, np.int32))
            p_list.append(idx.astype(np.int32))
            l_list.append(lab[idx].astype(np.int32))
    b_idx = np.concatenate(b_list, 0)
    p_idx = np.concatenate(p_list, 0)
    labs = np.concatenate(l_list, 0)
    if b_idx.shape[0] == 0:
        return None, None, None
    return b_idx, p_idx, labs


# -----------------------------------------------------------------------------
# CACLoss forward
# -----------------------------------------------------------------------------
def cac_loss_forward(predict, feature_map, label, weight_logit, *,
                     max_sample=1024, threshold=100, loss_weight=0.1,
                     temperature=0.1, base_temperature=0.07, fp=False,
                     hard_sort_hardmining=False, easy_sort_hardmining=False,
                     ignore_index=255, seed=0):
    B, C, H, W = predict.shape
    D = feature_map.shape[1]
    HW = H * W

    # label: nearest resize to feature resolution, flatten
    lab = nearest_resize_labels(label, H, W).reshape(B, HW)

    # NCHW -> (B, C, H*W): pixels already on the lane axis, no transpose needed
    pred3 = predict.reshape(B, C, HW)
    wl3 = weight_logit.reshape(B, C, HW)
    feat3 = feature_map.reshape(B, D, HW)

    # --- Pallas kernel 1: softmax / argmax / softmax / L2-normalize ---
    prob3, argmax3, wprob3, featn3 = preprocess(pred3, wl3, feat3)

    # --- host-side hard sample mining (dynamic shapes; minimal D2H traffic) ---
    pred_id = np.asarray(argmax3).reshape(B, HW)
    lab_np = np.asarray(lab)
    prob_np = (np.asarray(prob3)
               if (hard_sort_hardmining or easy_sort_hardmining) else None)

    rng = np.random.RandomState(seed)
    b_idx, p_idx, lab_s = hard_sample_mining_indices(
        pred_id, lab_np, prob_np,
        max_sample=max_sample, threshold=threshold, ignore_index=ignore_index,
        fp=fp, hard_sort=hard_sort_hardmining, easy_sort=easy_sort_hardmining,
        rng=rng)
    if b_idx is None:
        # torch: feature_map.mean() * 0
        return jnp.float32(0.0)

    N = int(b_idx.shape[0])
    K = int(lab_s.max()) + 1          # torch_scatter scatter_mean output size

    # gather selected samples on device (avoid full feature D2H transfer)
    bj = jnp.asarray(b_idx)
    pj = jnp.asarray(p_idx)
    feat_s = featn3[bj, :, pj]        # (N, D)
    prob_s = wprob3[bj, :, pj]        # (N, C)

    # pad to MXU-friendly sizes; D is NOT padded (full-dim block is legal)
    TILE = 256
    Np = max(TILE, round_up(N, TILE))
    Cp = round_up(max(C, K), 128)
    feat_p = jnp.zeros((Np, D), jnp.float32).at[:N, :].set(feat_s)
    prob_p = jnp.zeros((Np, Cp), jnp.float32).at[:N, :C].set(prob_s)
    lab_dev = jnp.full((Np,), -1, jnp.int32).at[:N].set(jnp.asarray(lab_s))
    onehot_p = jax.nn.one_hot(lab_dev, Cp, dtype=jnp.float32)

    # --- Pallas kernel 2: column-blocked contrastive loss ---
    cls_sum, cls_cnt = contrastive(
        feat_p, prob_p, onehot_p, n_valid=N,
        temperature=temperature, base_temperature=base_temperature,
        tr=TILE, tc=TILE)

    # scatter_mean over labels, mean over first K classes, * loss_weight
    total_sum = jnp.sum(cls_sum, axis=(0, 1))        # (Cp,)
    total_cnt = jnp.sum(cls_cnt, axis=(0, 1))        # (Cp,)
    cls_mean = total_sum / jnp.maximum(total_cnt, 1.0)
    loss = jnp.mean(cls_mean[:K]) * loss_weight
    return loss


# -----------------------------------------------------------------------------
if __name__ == "__main__":
    key = jax.random.PRNGKey(0)
    kp, kf, kw, kl = jax.random.split(key, 4)

    B, C, D, H, W = 2, 4, 32, 16, 16          # small shapes
    H0, W0 = 2 * H, 2 * W                     # label at 2x resolution

    predict = jax.random.normal(kp, (B, C, H, W), dtype=jnp.float32)
    feature_map = jax.random.normal(kf, (B, D, H, W), dtype=jnp.float32)
    weight_logit = jax.random.normal(kw, (B, C, H, W), dtype=jnp.float32)
    label = jax.random.randint(kl, (B, H0, W0), 0, C, dtype=jnp.int32)
    # sprinkle some ignore pixels
    label = label.at[:, :2, :2].set(255)

    loss = cac_loss_forward(
        predict, feature_map, label, weight_logit,
        max_sample=64, threshold=20, loss_weight=0.1,
        temperature=0.1, base_temperature=0.07,
        fp=False, ignore_index=255, seed=0)

    loss = jax.block_until_ready(loss)
    assert np.isfinite(np.asarray(loss)), "loss is not finite"
    print("KERNEL_OK")
</pallas_src>

<mosaic_0001>
module attributes {stable_mosaic.version = 11 : i64} {
  func.func @preprocess_kernel(%arg0: i32, %arg1: i32, %arg2: memref<1x4x256xf32, #tpu.memory_space<vmem>>, %arg3: memref<1x4x256xf32, #tpu.memory_space<vmem>>, %arg4: memref<1x32x256xf32, #tpu.memory_space<vmem>>, %arg5: memref<1x4x256xf32, #tpu.memory_space<vmem>>, %arg6: memref<1x1x256xi32, #tpu.memory_space<vmem>>, %arg7: memref<1x4x256xf32, #tpu.memory_space<vmem>>, %arg8: memref<1x32x256xf32, #tpu.memory_space<vmem>>) attributes {dimension_semantics = [#tpu.dimension_semantics<parallel>, #tpu.dimension_semantics<parallel>], iteration_bounds = array<i64: 2, 1>, scalar_prefetch = 0 : i64, scratch_operands = 0 : i64, tpu.core_type = #tpu.core_type<tc>, window_params = [{transform_indices = @transform_0, window_bounds = array<i64: 1, 4, 256>}, {transform_indices = @transform_1, window_bounds = array<i64: 1, 4, 256>}, {transform_indices = @transform_2, window_bounds = array<i64: 1, 32, 256>}, {transform_indices = @transform_3, window_bounds = array<i64: 1, 4, 256>}, {transform_indices = @transform_4, window_bounds = array<i64: 1, 1, 256>}, {transform_indices = @transform_5, window_bounds = array<i64: 1, 4, 256>}, {transform_indices = @transform_6, window_bounds = array<i64: 1, 32, 256>}]} {
    %c0 = arith.constant 0 : index
    %c0_0 = arith.constant 0 : index
    %c0_1 = arith.constant 0 : index
    %0 = vector.load %arg2[%c0, %c0_0, %c0_1] : memref<1x4x256xf32, #tpu.memory_space<vmem>>, vector<1x4x256xf32>
    %1 = vector.shape_cast %0 : vector<1x4x256xf32> to vector<4x256xf32>
    %cst = arith.constant dense<0xFF800000> : vector<256xf32>
    %2 = vector.multi_reduction <maximumf>, %1, %cst [0] : vector<4x256xf32> to vector<256xf32>
    %3 = vector.shape_cast %2 : vector<256xf32> to vector<1x256xf32>
    %4 = vector.broadcast %3 : vector<1x256xf32> to vector<4x256xf32>
    %5 = arith.subf %1, %4 : vector<4x256xf32>
    %6 = math.exp %5 : vector<4x256xf32>
    %cst_2 = arith.constant dense<0.000000e+00> : vector<256xf32>
    %7 = vector.multi_reduction <add>, %6, %cst_2 [0] : vector<4x256xf32> to vector<256xf32>
    %8 = vector.shape_cast %7 : vector<256xf32> to vector<1x256xf32>
    %9 = vector.broadcast %8 : vector<1x256xf32> to vector<4x256xf32>
    %10 = arith.divf %6, %9 : vector<4x256xf32>
    %c0_3 = arith.constant 0 : index
    %c0_4 = arith.constant 0 : index
    %c0_5 = arith.constant 0 : index
    %11 = vector.load %arg5[%c0_3, %c0_4, %c0_5] : memref<1x4x256xf32, #tpu.memory_space<vmem>>, vector<1x4x256xf32>
    %12 = vector.shape_cast %11 : vector<1x4x256xf32> to vector<4x256xf32>
    %13 = vector.shape_cast %10 : vector<4x256xf32> to vector<1x4x256xf32>
    tpu.vector_store %arg5[%c0_3, %c0_4, %c0_5], %13 {strides = array<i32>} : memref<1x4x256xf32, #tpu.memory_space<vmem>>, vector<1x4x256xf32>,
    %14 = tpu.iota {dimensions = array<i32: 0>} : vector<4x256xi32>
    %15 = vector.broadcast %3 : vector<1x256xf32> to vector<4x256xf32>
    %16 = arith.cmpf oeq, %1, %15 : vector<4x256xf32>
    %c1073741824_i32 = arith.constant 1073741824 : i32
    %17 = vector.broadcast %c1073741824_i32 : i32 to vector<4x256xi32>
    %18 = arith.select %16, %14, %17 : vector<4x256xi1>, vector<4x256xi32>
    %cst_6 = arith.constant dense<2147483647> : vector<256xi32>
    %19 = vector.multi_reduction <minsi>, %18, %cst_6 [0] : vector<4x256xi32> to vector<256xi32>
    %20 = vector.shape_cast %19 : vector<256xi32> to vector<1x256xi32>
    %c0_7 = arith.constant 0 : index
    %c0_8 = arith.constant 0 : index
    %c0_9 = arith.constant 0 : index
    %21 = vector.load %arg6[%c0_7, %c0_8, %c0_9] : memref<1x1x256xi32, #tpu.memory_space<vmem>>, vector<1x1x256xi32>
    %22 = vector.shape_cast %21 : vector<1x1x256xi32> to vector<1x256xi32>
    %23 = vector.shape_cast %20 : vector<1x256xi32> to vector<1x1x256xi32>
    tpu.vector_store %arg6[%c0_7, %c0_8, %c0_9], %23 {strides = array<i32>} : memref<1x1x256xi32, #tpu.memory_space<vmem>>, vector<1x1x256xi32>,
    %c0_10 = arith.constant 0 : index
    %c0_11 = arith.constant 0 : index
    %c0_12 = arith.constant 0 : index
    %24 = vector.load %arg3[%c0_10, %c0_11, %c0_12] : memref<1x4x256xf32, #tpu.memory_space<vmem>>, vector<1x4x256xf32>
    %25 = vector.shape_cast %24 : vector<1x4x256xf32> to vector<4x256xf32>
    %cst_13 = arith.constant dense<0xFF800000> : vector<256xf32>
    %26 = vector.multi_reduction <maximumf>, %25, %cst_13 [0] : vector<4x256xf32> to vector<256xf32>
    %27 = vector.shape_cast %26 : vector<256xf32> to vector<1x256xf32>
    %28 = vector.broadcast %27 : vector<1x256xf32> to vector<4x256xf32>
    %29 = arith.subf %25, %28 : vector<4x256xf32>
    %30 = math.exp %29 : vector<4x256xf32>
    %cst_14 = arith.constant dense<0.000000e+00> : vector<256xf32>
    %31 = vector.multi_reduction <add>, %30, %cst_14 [0] : vector<4x256xf32> to vector<256xf32>
    %32 = vector.shape_cast %31 : vector<256xf32> to vector<1x256xf32>
    %33 = vector.broadcast %32 : vector<1x256xf32> to vector<4x256xf32>
    %34 = arith.divf %30, %33 : vector<4x256xf32>
    %c0_15 = arith.constant 0 : index
    %c0_16 = arith.constant 0 : index
    %c0_17 = arith.constant 0 : index
    %35 = vector.load %arg7[%c0_15, %c0_16, %c0_17] : memref<1x4x256xf32, #tpu.memory_space<vmem>>, vector<1x4x256xf32>
    %36 = vector.shape_cast %35 : vector<1x4x256xf32> to vector<4x256xf32>
    %37 = vector.shape_cast %34 : vector<4x256xf32> to vector<1x4x256xf32>
    tpu.vector_store %arg7[%c0_15, %c0_16, %c0_17], %37 {strides = array<i32>} : memref<1x4x256xf32, #tpu.memory_space<vmem>>, vector<1x4x256xf32>,
    %c0_18 = arith.constant 0 : index
    %c0_19 = arith.constant 0 : index
    %c0_20 = arith.constant 0 : index
    %38 = vector.load %arg4[%c0_18, %c0_19, %c0_20] : memref<1x32x256xf32, #tpu.memory_space<vmem>>, vector<1x32x256xf32>
    %39 = vector.shape_cast %38 : vector<1x32x256xf32> to vector<32x256xf32>
    %40 = arith.mulf %39, %39 : vector<32x256xf32>
    %cst_21 = arith.constant dense<0.000000e+00> : vector<256xf32>
    %41 = vector.multi_reduction <add>, %40, %cst_21 [0] : vector<32x256xf32> to vector<256xf32>
    %42 = vector.shape_cast %41 : vector<256xf32> to vector<1x256xf32>
    %43 = math.sqrt %42 : vector<1x256xf32>
    %cst_22 = arith.constant 9.99999996E-13 : f32
    %44 = vector.broadcast %cst_22 : f32 to vector<1x256xf32>
    %45 = arith.maximumf %43, %44 : vector<1x256xf32>
    %46 = vector.broadcast %45 : vector<1x256xf32> to vector<32x256xf32>
    %47 = arith.divf %39, %46 : vector<32x256xf32>
    %c0_23 = arith.constant 0 : index
    %c0_24 = arith.constant 0 : index
    %c0_25 = arith.constant 0 : index
    %48 = vector.load %arg8[%c0_23, %c0_24, %c0_25] : memref<1x32x256xf32, #tpu.memory_space<vmem>>, vector<1x32x256xf32>
    %49 = vector.shape_cast %48 : vector<1x32x256xf32> to vector<32x256xf32>
    %50 = vector.shape_cast %47 : vector<32x256xf32> to vector<1x32x256xf32>
    tpu.vector_store %arg8[%c0_23, %c0_24, %c0_25], %50 {strides = array<i32>} : memref<1x32x256xf32, #tpu.memory_space<vmem>>, vector<1x32x256xf32>,
    return
  }
  func.func @transform_0(%arg0: i32, %arg1: i32) -> (i32, i32, i32) {
    %c0_i32 = arith.constant 0 : i32
    %c0_i32_0 = arith.constant 0 : i32
    return %arg0, %c0_i32, %arg1 : i32, i32, i32
  }
  func.func @transform_1(%arg0: i32, %arg1: i32) -> (i32, i32, i32) {
    %c0_i32 = arith.constant 0 : i32
    %c0_i32_0 = arith.constant 0 : i32
    return %arg0, %c0_i32, %arg1 : i32, i32, i32
  }
  func.func @transform_2(%arg0: i32, %arg1: i32) -> (i32, i32, i32) {
    %c0_i32 = arith.constant 0 : i32
    %c0_i32_0 = arith.constant 0 : i32
    return %arg0, %c0_i32, %arg1 : i32, i32, i32
  }
  func.func @transform_3(%arg0: i32, %arg1: i32) -> (i32, i32, i32) {
    %c0_i32 = arith.constant 0 : i32
    %c0_i32_0 = arith.constant 0 : i32
    return %arg0, %c0_i32, %arg1 : i32, i32, i32
  }
  func.func @transform_4(%arg0: i32, %arg1: i32) -> (i32, i32, i32) {
    %c0_i32 = arith.constant 0 : i32
    %c0_i32_0 = arith.constant 0 : i32
    return %arg0, %c0_i32, %arg1 : i32, i32, i32
  }
  func.func @transform_5(%arg0: i32, %arg1: i32) -> (i32, i32, i32) {
    %c0_i32 = arith.constant 0 : i32
    %c0_i32_0 = arith.constant 0 : i32
    return %arg0, %c0_i32, %arg1 : i32, i32, i32
  }
  func.func @transform_6(%arg0: i32, %arg1: i32) -> (i32, i32, i32) {
    %c0_i32 = arith.constant 0 : i32
    %c0_i32_0 = arith.constant 0 : i32
    return %arg0, %c0_i32, %arg1 : i32, i32, i32
  }
}

</mosaic_0001>

<bundles_post_ra>
// kernel: tpu_custom_call.1
= control target key start
LH: loop header
LB: loop body
LE: loop exit
PB: predicated region body
PF: predicated region fallthrough
CT: control target
= control target key end

     0   :  { %s1915_s0 = inlined_call_operand.hbm [shape: f32[2,4,256], index: 0, kind: input, shape index: {}]   ;;  %s1916_s1 = inlined_call_operand.hbm [shape: f32[2,4,256], index: 1, kind: input, shape index: {}]   ;;  %s1917_s2 = inlined_call_operand.hbm [shape: f32[2,32,256], index: 2, kind: input, shape index: {}]   ;;  %s1918_s3 = inlined_call_operand.hbm [shape: f32[2,4,256], index: 3, kind: output, shape index: {0}]   ;;  %s1919_s4 = inlined_call_operand.hbm [shape: s32[2,1,256], index: 4, kind: output, shape index: {1}]   ;;  %s1920_s5 = inlined_call_operand.hbm [shape: f32[2,4,256], index: 5, kind: output, shape index: {2}]   ;;  %s1921_s6 = inlined_call_operand.hbm [shape: f32[2,32,256], index: 6, kind: output, shape index: {3}]  }
   0x1   :  { %1933 = sst [smem:[#allocation25_spill]] %s1916_s1 }
   0x2   :  { %12 = vsyncpa [#allocation3], 0 }
   0x3   :  { %14 = vsyncpa [#allocation3 + $0x1], 0 }
   0x4   :  { %15 = vsyncpa [#allocation6], 0 }
   0x5   :  { %17 = vsyncpa [#allocation6 + $0x1], 0 }
   0x6   :  { %18 = vsyncpa [#allocation4], 0 }
   0x7   :  { %20 = vsyncpa [#allocation4 + $0x1], 0 }
   0x8   :  { %21 = vsyncpa [#allocation10], 0 }
   0x9   :  { %23 = vsyncpa [#allocation10 + $0x1], 0 }
   0xa   :  { %24 = vsyncpa [#allocation13], 0 }
   0xb   :  { %26 = vsyncpa [#allocation13 + $0x1], 0  ;;  %s1417_s21 = smov 0   ;;  %s1419_s22 = smov 0  }
   0xc   :  { %s1421_s23 = smov 0   ;;  %s1423_s24 = smov 0  }
   0xd   :  { %s1425_s25 = smov 0   ;;  %s1427_s26 = smov 0  }
   0xe LB: > { %1934 = sst [smem:[#allocation19_spill]] %s1347_s21  ;;  %s1448_s27 = sadd.s32 4294967295, %s1367_s26   ;;  %s1367_s26 = sphi %s1427_s26, %s32_s26   ;;  %s1363_s25 = sphi %s1425_s25, %s1967_s25   ;;  %s1359_s24 = sphi %s1423_s24, %s1966_s24   ;;  %s1355_s23 = sphi %s1421_s23, %s1962_s23   ;;  %s1351_s22 = sphi %s1419_s22, %s1965_s22   ;;  %s1347_s21 = sphi %s1417_s21, %s1964_s21  }
   0xf   : > { %1935 = sst [smem:[#allocation20_spill]] %s1355_s23  ;;  %s1922_s28 = sadd.s32 4294967294, %s1367_s26  }
  0x10   : > { %1936 = sst [smem:[#allocation21_spill]] %s1367_s26  ;;  %s44_s29 = sadd.s32 1, %s1363_s25 }
  0x11   : > { %s53_s30 = sadd.s32 1, %s1355_s23  ;;  %p46_p0 = scmp.ge.s32.totalorder %s44_s29, 2 }
  0x12   : > { %p60_p1 = scmp.ne.s32.totalorder %s1355_s23, %s1351_s22  ;;  %p61_p2 = scmp.eq.s32.totalorder %s1367_s26, 0 }
  0x13   : > { %p66_p3 = scmp.ne.s32.totalorder %s1351_s22, %s1347_s21  ;;  %s1969_s29 = smov (%p46_p0, %s44_s29), 0 }
  0x14   : > { %1937 = sst [smem:[#allocation22_spill]] %s1969_s29  ;;  %p1460_p4 = por %p61_p2, %p60_p1 }
  0x15   : > { %p67_p5 = scmp.eq.s32.totalorder %s1448_s27, 0  ;;  %s48_s8 = ssub.s32 %s1363_s25, %s1969_s29 }
  0x16   : > { %p148_p6 = scmp.eq.s32.totalorder %s1448_s27, 1  ;;  %p51_p7 = scmp.eq.s32.totalorder %s48_s8, 0 }
  0x17   : > { %p1468_p8 = por %p67_p5, %p66_p3  ;;  %p154_p10 = scmp.eq.s32.totalorder %s1922_s28, 1 }
  0x18   : > { %p1472_p9 = por %p148_p6, %p60_p1  ;;  %p1025_p13 = scmp.lt.s32.totalorder %s1367_s26, 2 }
  0x19   : > { %s1939_s9 = scalar_select %p1468_p8, 1, 0 }
  0x1a   : > { %s1940_s10 = scalar_select %p1472_p9, 1, 0 }
  0x1b   : > { %s1479_s11 = scalar_select %p51_p7, %s1355_s23, %s53_s30  }
  0x1c   : > { %p1481_p11 = por %p154_p10, %p66_p3  ;;  %s1488_s13 = sand.u32 1, %s1355_s23  }
  0x1d   : > { %1941 = sst [smem:[#allocation23_spill]] %s1479_s11  ;;  %s1924_s14 = sshll.u32 %s1488_s13, 3 }
  0x1e   : > { %s1942_s12 = scalar_select %p1481_p11, 1, 0 }
  0x1f   : > { %s1925_s15 = sshll.u32 %s1363_s25, 7  ;;  %p1494_p0 = pnand %p1025_p13, %p1460_p4 }
  0x20   : > { %1943 = sst [smem:[#allocation24_spill]] %s1942_s12  ;;  %s279_s17 = sand.u32 1, %s1367_s26  }
  0x21   : > { %s1945_s1 = sld [smem:[#allocation25_spill]]  ;;  %s283_s30 = scalar_lea.vmem [#allocation5], %s1924_s14 }
  0x22   : > { %s293_s8 = sshll.u32 %s283_s30, 4  ;;  %s956_s7 = sshll.u32 %s1488_s13, 6  ;;  %s1509_s8 = int_to_ptr.vmem [resolvable:$true] %s293_s8 }
  0x23   : > { %s1511_s28 = scalar_lea.sflag [#allocation6], %s279_s17  ;;  %p1517_p2 = pneg %p1494_p0 }
  0x27   : > { %s1504_s20 = scalar_lea.hbm %s1945_s1, %s1925_s15  ;;  %s1104_s30 = scalar_lea.hbm %s1945_s1, 256 }
  0x28   : > { %s1099_s29 = scalar_lea.hbm %s1504_s20, 128  ;;  %p1105_p5 = scmp.lt.u32.totalorder %s1504_s20, %s1945_s1 }
  0x29   : > { %p1100_p1 = scmp.ne.s32.totalorder %s1504_s20, %s1099_s29  ;;  %p1106_p6 = scmp.lt.u32.totalorder %s1104_s30, %s1099_s29 }
  0x2a   : > { %p1108_p10 = scmp.lt.u32.totalorder %s1099_s29, %s1504_s20 }
  0x2b   : > { %p1102_p3 = pnand %p1517_p2, %p1100_p1  ;;  %p1107_p7 = por %p1106_p6, %p1105_p5 }
  0x2d   : > { %p1103_p4 = pneg %p1102_p3  ;;  %p1109_p13 = por %p1108_p10, %p1107_p7 }
  0x2f   : > { %p1110_p12 = pnand %p1109_p13, %p1103_p4 }
  0x31   : > { %1113 = shalt.err (!%p1110_p12)
}
  0x32   : > { %s1114_s17 = scalar_lea.vmem %s1509_s8, 128  ;;  %s1369_s18 = smov [#allocation5]  }
  0x33   : > { %p1115_p1 = scmp.ne.s32.totalorder %s1509_s8, %s1114_s17  ;;  %s1119_s19 = sshll.u32 %s1369_s18, 4  ;;  %s1120_s19 = int_to_ptr.vmem [resolvable:$false] %s1119_s19 }
  0x34   : > { %s1121_s14 = scalar_lea.vmem %s1120_s19, 256  ;;  %p1122_p9 = scmp.lt.s32.totalorder %s1509_s8, %s1120_s19 }
  0x35   : > { %p1117_p3 = pnand %p1115_p1, %p1517_p2  ;;  %p1123_p8 = scmp.lt.s32.totalorder %s1121_s14, %s1114_s17 }
  0x37   : > { %p1118_p11 = pneg %p1117_p3  ;;  %p1124_p5 = por %p1123_p8, %p1122_p9 }
  0x39   : > { %p1125_p6 = pnand %p1124_p5, %p1118_p11 }
  0x3b   : > { %1128 = shalt.err (!%p1125_p6)
}
  0x3c   : > { %1008 = dma.hbm_to_vmem [thread:$0]  (!%p1494_p0), %s1504_s20, 128, %s1509_s8, %s1511_s28  }
  0x3d   : > { %s304_s29 = scalar_lea.vmem [#allocation7], %s956_s7  ;;  %p959_p8 = scmp.ge.s32.totalorder %s1367_s26, 1 }
  0x3e   : > { %s313_s15 = sshll.u32 %s304_s29, 4  ;;  %p321_p9 = scmp.lt.s32.totalorder %s1367_s26, 3  ;;  %s1544_s15 = int_to_ptr.vmem [resolvable:$true] %s313_s15 }
  0x3f   : > { %s1948_s17 = sshll.u32 %s1363_s25, 7  ;;  %s1949_s1 = sshll.u32 %s1488_s13, 3 }
  0x40   : > { %p1547_p11 = pnand %p959_p8, %p321_p9  ;;  %s1556_s14 = scalar_lea.hbm %s1915_s0, %s1948_s17 }
  0x41   : > { %s262_s20 = scalar_lea.vmem [#allocation2], %s1949_s1  ;;  %s983_s7 = sshll.u32 %s1363_s25, 10 }
  0x42   : > { %s1947_s30 = scalar_select %p1547_p11, 1, 0 }
  0x43   : > { %s272_s8 = sshll.u32 %s262_s20, 4  ;;  %s1566_s26 = scalar_lea.hbm %s1917_s2, %s983_s7  ;;  %s1561_s8 = int_to_ptr.vmem [resolvable:$true] %s272_s8 }
  0x44   : > { %s259_s12 = scalar_lea.sflag [#allocation3], %s1488_s13  ;;  %s1129_s21 = scalar_lea.hbm %s1556_s14, 128 }
  0x45   : > { %p1130_p12 = scmp.ne.s32.totalorder %s1556_s14, %s1129_s21  ;;  %s1134_s19 = scalar_lea.hbm %s1915_s0, 256 }
  0x46   : > { %p1135_p10 = scmp.lt.u32.totalorder %s1556_s14, %s1915_s0  ;;  %p1136_p13 = scmp.lt.u32.totalorder %s1134_s19, %s1129_s21 }
  0x47   : > { %p1132_p4 = pnand %p1130_p12, %p1517_p2  ;;  %p1138_p3 = scmp.lt.u32.totalorder %s1129_s21, %s1556_s14 }
  0x48   : > { %p1137_p1 = por %p1136_p13, %p1135_p10 }
  0x49   : > { %p1133_p7 = pneg %p1132_p4 }
  0x4a   : > { %p1139_p5 = por %p1138_p3, %p1137_p1 }
  0x4c   : > { %p1140_p6 = pnand %p1139_p5, %p1133_p7 }
  0x4e   : > { %1143 = shalt.err (!%p1140_p6)
}
  0x4f   : > { %s1144_s23 = scalar_lea.vmem %s1561_s8, 128  ;;  %s1370_s13 = smov [#allocation2]  }
  0x50   : > { %p1145_p8 = scmp.ne.s32.totalorder %s1561_s8, %s1144_s23  ;;  %s1149_s7 = sshll.u32 %s1370_s13, 4  ;;  %s1150_s7 = int_to_ptr.vmem [resolvable:$false] %s1149_s7 }
  0x51   : > { %s1151_s29 = scalar_lea.vmem %s1150_s7, 256  ;;  %p1152_p4 = scmp.lt.s32.totalorder %s1561_s8, %s1150_s7 }
  0x52   : > { %p1147_p9 = pnand %p1145_p8, %p1517_p2  ;;  %p1153_p11 = scmp.lt.s32.totalorder %s1151_s29, %s1144_s23 }
  0x54   : > { %p1148_p12 = pneg %p1147_p9  ;;  %p1154_p10 = por %p1153_p11, %p1152_p4 }
  0x56   : > { %p1155_p13 = pnand %p1154_p10, %p1148_p12 }
  0x58   : > { %1158 = shalt.err (!%p1155_p13)
}
  0x59   : > { %1005 = dma.hbm_to_vmem [thread:$0]  (!%p1494_p0), %s1556_s14, 128, %s1561_s8, %s259_s12  }
  0x5a   : > { %s1159_s21 = scalar_lea.hbm %s1566_s26, 1024  ;;  %s1164_s19 = scalar_lea.hbm %s1917_s2, 2048 }
  0x5b   : > { %p1160_p7 = scmp.ne.s32.totalorder %s1566_s26, %s1159_s21  ;;  %p1165_p11 = scmp.lt.u32.totalorder %s1566_s26, %s1917_s2 }
  0x5c   : > { %p1166_p5 = scmp.lt.u32.totalorder %s1164_s19, %s1159_s21  ;;  %p1168_p8 = scmp.lt.u32.totalorder %s1159_s21, %s1566_s26 }
  0x5d   : > { %p1162_p1 = pnand %p1160_p7, %p1517_p2 }
  0x5e   : > { %p1167_p6 = por %p1166_p5, %p1165_p11 }
  0x5f   : > { %p1163_p3 = pneg %p1162_p1 }
  0x60   : > { %p1169_p9 = por %p1168_p8, %p1167_p6 }
  0x62   : > { %p1170_p12 = pnand %p1169_p9, %p1163_p3 }
  0x64   : > { %1173 = shalt.err (!%p1170_p12)
}
  0x65   : > { %s1174_s12 = scalar_lea.vmem %s1544_s15, 1024  ;;  %s1371_s14 = smov [#allocation7]  }
  0x66   : > { %p1175_p4 = scmp.ne.s32.totalorder %s1544_s15, %s1174_s12  ;;  %s1179_s8 = sshll.u32 %s1371_s14, 4  ;;  %s1180_s8 = int_to_ptr.vmem [resolvable:$false] %s1179_s8 }
  0x67   : > { %s1181_s23 = scalar_lea.vmem %s1180_s8, 2048  ;;  %p1182_p7 = scmp.lt.s32.totalorder %s1544_s15, %s1180_s8 }
  0x68   : > { %p1177_p10 = pnand %p1175_p4, %p1517_p2  ;;  %p1183_p1 = scmp.lt.s32.totalorder %s1181_s23, %s1174_s12 }
  0x6a   : > { %p1178_p13 = pneg %p1177_p10  ;;  %p1184_p11 = por %p1183_p1, %p1182_p7 }
  0x6c   : > { %p1185_p5 = pnand %p1184_p11, %p1178_p13 }
  0x6e   : > { %1188 = shalt.err (!%p1185_p5)
}
  0x6f   : > { %s1372_s13 = smov 256   ;;  %s1373_s7 = smov 16  }
  0x70   : > { %1011 = dma.hbm_to_vmem [thread:$0]  (!%p1494_p0), %s1566_s26, 1024, %s1544_s15, %s1511_s28, %s1372_s13, %s1372_s13, %s1373_s7  }
  0x71   : > { %p1950_p2 = scmp.ne.s32.totalorder %s1947_s30, 0 }
  0x72   : > { %s1615_s11 = sand.u32 (!%p1950_p2), 1, %s1351_s22   ;;  %p1951_p3 = scmp.ne.s32.totalorder (!%p1950_p2), %s1939_s9, 0 }
  0x73   : > { %325 = sbr.rel (%p1950_p2) target bundleno = 259 (0x103), region = 32  ;;  %s1618_s29 = sshll.u32 (!%p1950_p2), %s1615_s11, 3 }
  0x74   : > { %s328_s21 = scalar_lea.sflag (!%p1950_p2), [#allocation3], %s1615_s11  ;;  %s331_s17 = scalar_lea.vmem (!%p1950_p2), [#allocation2], %s1618_s29 }
  0x7a   : > { %1326 = dma.done.wait (%p1951_p3), %s328_s21, 128  }
  0x7b   : > { %1328 = vsyncadd (%p1951_p3), %s328_s21, 4294967168  ;;  %s336_s26 = sand.u32 1, %s1448_s27   ;;  %s340_s16 = scalar_lea.vmem [#allocation5], %s1618_s29 }
  0x7c   : > { %s337_s28 = scalar_lea.sflag [#allocation6], %s336_s26 }
  0x7d   : > { %1330 = dma.done.wait (%p1951_p3), %s337_s28, 1152  }
  0x7e   : > { %1332 = vsyncadd (%p1951_p3), %s337_s28, 4294966144  ;;  %v460_v0 = vlaneseq  ;;  %s962_s15 = sshll.u32 %s1615_s11, 6  ;;  %vm414_vm0 = vcmask 1043456   ;;  %v1635_v1 = vld [vmem:[%s331_s17] sm:$0xff]  ;;  %v1374_v3 = vmov 839922192  }
  0x7f   : > { %v464_v4 = vunpack.c.l.s4 %v1374_v3  ;;  %v1640_v5 = vld [vmem:[%s340_s16] sm:$0xff]  ;;  %s349_s30 = scalar_lea.vmem [#allocation7], %s962_s15  ;;  %v412_v7 = vcombine.high %v1635_v1, %v1635_v1  ;;  %v415_v8 = vsel %vm414_vm0, %v1635_v1, -inf  ;;  %s964_s9 = sshll.u32 %s1615_s11, 1 }
  0x80   : > { %v1638_v2 = vshrl.u32 %v460_v0, 7  ;;  %v1644_v6 = vld [vmem:[%s349_s30] sm:$0xff]  ;;  %v514_v9 = vcombine.high %v1640_v5, %v1640_v5  ;;  %v516_v10 = vsel %vm414_vm0, %v1640_v5, -inf  ;;  %v1654_v11 = vld [vmem:[%s349_s30 + $0x10] sm:$0xff]  ;;  %v416_v14 = vrot.slane %v415_v8, 4  ;;  %v1664_v18 = vld [vmem:[%s349_s30 + $0x8] sm:$0xff] }
  0x81   : > { %v1656_v12 = vld [vmem:[%s349_s30 + $0x20] sm:$0xff]  ;;  %v1658_v13 = vld [vmem:[%s349_s30 + $0x30] sm:$0xff]  ;;  %v517_v15 = vrot.slane %v516_v10, 4  ;;  %v569_v16 = vmul.f32 %v1644_v6, %v1644_v6  ;;  %v571_v17 = vmul.f32 %v1654_v11, %v1654_v11  ;;  %v1666_v19 = vld [vmem:[%s349_s30 + $0x18] sm:$0xff]  ;;  %v422_v21 = vsel %vm414_vm0, %v412_v7, -inf  ;;  %s388_s18 = scalar_lea.vmem [#allocation9], %s964_s9 }
  0x82   : > { %v1668_v20 = vld [vmem:[%s349_s30 + $0x28] sm:$0xff]  ;;  %v523_v22 = vsel %vm414_vm0, %v514_v9, -inf  ;;  %v573_v23 = vmul.f32 %v1656_v12, %v1656_v12  ;;  %v575_v24 = vmul.f32 %v1658_v13, %v1658_v13  ;;  %v417_v25 = vmax.f32 %v415_v8, %v416_v14  ;;  %v1676_v29 = vld [vmem:[%s349_s30 + $0x38] sm:$0xff]  ;;  %s677_s19 = sshll.u32 %s388_s18, 4  ;;  %s985_s1 = sshll.u32 %s1359_s24, 5  ;;  %s1731_s19 = int_to_ptr.vmem [resolvable:$true] %s677_s19 }
  0x83   : > { %v423_v26 = vrot.slane %v422_v21, 4  ;;  %v518_v27 = vmax.f32 %v516_v10, %v517_v15  ;;  %v524_v28 = vrot.slane %v523_v22, 4  ;;  %v577_v30 = vadd.f32 %v571_v17, %v569_v16  ;;  %s1739_s14 = scalar_lea.hbm %s1919_s4, %s985_s1  ;;  %s1750_s8 = scalar_lea.sflag [#allocation10], %s336_s26 }
  0x84   : > { %v570_v31 = vmul.f32 %v1664_v18, %v1664_v18  ;;  %v572_v32 = vmul.f32 %v1666_v19, %v1666_v19  ;;  %v574_v33 = vmul.f32 %v1668_v20, %v1668_v20  ;;  %v418_v34 = vrot.slane %v417_v25, 2  ;;  %s1189_s23 = scalar_lea.vmem %s1731_s19, 32  ;;  %p1954_p6 = scmp.ne.s32.totalorder %s1940_s10, 0 }
  0x85   : > { %v424_v35 = vmax.f32 %v422_v21, %v423_v26  ;;  %v519_v36 = vrot.slane %v518_v27, 2  ;;  %v525_v37 = vmax.f32 %v523_v22, %v524_v28  ;;  %v465_v38 = vunpack.c.0.s8 %v464_v4  ;;  %p1190_p0 = scmp.ne.s32.totalorder %s1731_s19, %s1189_s23  ;;  %s1376_s13 = smov [#allocation9]  }
  0x86   : > { %v578_v39 = vadd.f32 %v577_v30, %v573_v23  ;;  %v576_v40 = vmul.f32 %v1676_v29, %v1676_v29  ;;  %v586_v41 = vadd.f32 %v572_v32, %v570_v31  ;;  %v419_v42 = vmax.f32 %v417_v25, %v418_v34  ;;  %s1193_s7 = sshll.u32 %s1376_s13, 4  ;;  %s1194_s7 = int_to_ptr.vmem [resolvable:$false] %s1193_s7 }
  0x87   : > { %v425_v43 = vrot.slane %v424_v35, 2  ;;  %v520_v44 = vmax.f32 %v518_v27, %v519_v36  ;;  %v526_v45 = vrot.slane %v525_v37, 2  ;;  %v468_v52 = vsub.s32 %v465_v38, %v1638_v2  ;;  %p1191_p8 = pnand %p1190_p0, %p1954_p6  ;;  %s1195_s21 = scalar_lea.vmem %s1194_s7, 64 }
  0x88   : > { %v579_v46 = vadd.f32 %v578_v39, %v575_v24  ;;  %v587_v47 = vadd.f32 %v586_v41, %v574_v33  ;;  %v420_v48 = vrot.slane %v419_v42, 1  ;;  %v1375_v31 = vmov 1966171168   ;;  %p1196_p12 = scmp.lt.s32.totalorder %s1731_s19, %s1194_s7  ;;  %p1197_p4 = scmp.lt.s32.totalorder %s1195_s21, %s1189_s23 }
  0x89   : > { %v426_v49 = vmax.f32 %v424_v35, %v425_v43  ;;  %v521_v50 = vrot.slane %v520_v44, 1  ;;  %v527_v51 = vmax.f32 %v525_v37, %v526_v45  ;;  %v469_v63 = vrot.slane %v1638_v2, %v468_v52  ;;  %p1192_p9 = pneg %p1191_p8 }
  0x8a   : > { %v580_v53 = vrot.slane %v579_v46, 4  ;;  %v588_v54 = vadd.f32 %v587_v47, %v576_v40  ;;  %v421_v55 = vmax.f32 %v419_v42, %v420_v48  ;;  %vm1701_vm6 = vcmp.lt.s32.totalorder %v460_v0, 256  ;;  %p1198_p10 = por %p1197_p4, %p1196_p12 }
  0x8b   : > { %v427_v56 = vrot.slane %v426_v49, 1  ;;  %v522_v57 = vmax.f32 %v520_v44, %v521_v50  ;;  %v528_v58 = vrot.slane %v527_v51, 1 }
  0x8c   : > { %v581_v59 = vadd.f32 %v580_v53, %v579_v46  ;;  %v589_v60 = vrot.slane %v588_v54, 4  ;;  %p1199_p13 = pnand %p1198_p10, %p1192_p9 }
  0x8d   : > { %v428_v61 = vmax.f32 %v426_v49, %v427_v56  ;;  %v529_v62 = vmax.f32 %v527_v51, %v528_v58 }
  0x8e   : > { %v582_v3 = vrot.slane %v581_v59, 2  ;;  %v590_v4 = vadd.f32 %v589_v60, %v588_v54 }
  0x8f   : > { %v431_v7 = vcombine.low %v421_v55, %v428_v61  ;;  %v532_v8 = vcombine.low %v522_v57, %v529_v62 }
  0x90   : > { %v583_v9 = vadd.f32 %v582_v3, %v581_v59  ;;  %v591_v10 = vrot.slane %v590_v4, 2 }
  0x91   : > { %v433_v14 = vsub.f32 %v1635_v1, %v431_v7  ;;  %vm462_vm1 = vcmp.eq.f32.partialorder %v1635_v1, %v431_v7  ;;  %v534_v15 = vsub.f32 %v1640_v5, %v532_v8  ;;  %v494_v5 = vunpack.c.l.s4 %v1375_v31 }
  0x92   : > { %v470_v16 = vsel %vm462_vm1, %v469_v63, 1073741824  ;;  %v584_v17 = vrot.slane %v583_v9, 1  ;;  %v592_v21 = vadd.f32 %v591_v10, %v590_v4 }
  0x93   : > { %v434_v22 = vmul.f32 1.442695, %v433_v14  ;;  %v471_v23 = vcombine.high %v470_v16, %v470_v16  ;;  %v472_v24 = vsel %vm414_vm0, %v470_v16, 2147483647  ;;  %v535_v25 = vmul.f32 1.442695, %v534_v15 }
  0x94   : > { %v473_v26 = vrot.slane %v472_v24, 4  ;;  %v1692_v27 = vadd.f32 %v584_v17, %v583_v9  ;;  %v593_v28 = vrot.slane %v592_v21, 1  ;;  %v495_v37 = vunpack.c.0.s8 %v494_v5 }
  0x95   : > { %1083 = vpow2.f32 %v434_v22  ;;  %v482_v30 = vsel %vm414_vm0, %v471_v23, 2147483647 }
  0x96   : > { %vm474_vm2 = vcmp.lt.s32.totalorder %v472_v24, %v473_v26  ;;  %v483_v1 = vrot.slane %v482_v30, 4  ;;  %1085 = vpow2.f32 %v535_v25  ;;  %v1696_v34 = vadd.f32 %v593_v28, %v592_v21 }
  0x97   : > { %v475_v32 = vsel %vm474_vm2, %v472_v24, %v473_v26  ;;  %1087 = vrsqrt.f32 %v1692_v27  ;;  %v498_v43 = vsub.s32 %v495_v37, %v1638_v2  ;;  %vm597_vm8 = vcmp.eq.f32.partialorder %v1692_v27, inf }
  0x98   : > { %v476_v33 = vrot.slane %v475_v32, 2  ;;  %vm484_vm3 = vcmp.lt.s32.totalorder %v482_v30, %v483_v1  ;;  %1089 = vrsqrt.f32 %v1696_v34  ;;  %vm599_vm9 = vcmp.eq.f32.partialorder %v1692_v27, 0.0 }
  0x99   : > { %v485_v35 = vsel %vm484_vm3, %v482_v30, %v483_v1  ;;  %v600_v46 = vand.u32 2147483648, %v1692_v27  ;;  %vm604_vm10 = vcmp.eq.f32.partialorder %v1696_v34, inf  ;;  %vm606_vm12 = vcmp.eq.f32.partialorder %v1696_v34, 0.0 }
  0x9a   : > { %vm477_vm4 = vcmp.lt.s32.totalorder %v475_v32, %v476_v33  ;;  %v486_v36 = vrot.slane %v485_v35, 2  ;;  %v607_v60 = vand.u32 2147483648, %v1696_v34 }
  0x9b   : > { %v478_v38 = vsel %vm477_vm4, %v475_v32, %v476_v33 }
  0x9c   : > { %v479_v39 = vrot.slane %v478_v38, 1  ;;  %vm487_vm5 = vcmp.lt.s32.totalorder %v485_v35, %v486_v36 }
  0x9d   : > { %v488_v40 = vsel %vm487_vm5, %v485_v35, %v486_v36 }
  0x9e   : > { %vm480_vm7 = vcmp.lt.s32.totalorder %v478_v38, %v479_v39  ;;  %v489_v42 = vrot.slane %v488_v40, 1 }
  0x9f   : > { %v1707_v44 = vpop.eup %1083  ;;  %v481_v45 = vsel %vm480_vm7, %v478_v38, %v479_v39 }
  0xa0   : > { %v1712_v47 = vpop.eup %1085  ;;  %vm490_vm11 = vcmp.lt.s32.totalorder %v488_v40, %v489_v42  ;;  %v437_v0 = vcombine.high %v1707_v44, %v1707_v44  ;;  %v439_v2 = vsel %vm414_vm0, %v1707_v44, 0.0 }
  0xa1   : > { %v1088_v48 = vpop.eup %1087  ;;  %v491_v49 = vsel %vm490_vm11, %v488_v40, %v489_v42  ;;  %v440_v50 = vrot.slane %v439_v2, 4  ;;  %v538_v51 = vcombine.high %v1712_v47, %v1712_v47  ;;  %v540_v52 = vsel %vm414_vm0, %v1712_v47, 0.0 }
  0xa2   : > { %v492_v53 = vcombine.low %v481_v45, %v491_v49  ;;  %v446_v54 = vsel %vm414_vm0, %v437_v0, 0.0  ;;  %v541_v55 = vrot.slane %v540_v52, 4  ;;  %v596_v56 = vmul.f32 %v1088_v48, %v1692_v27  ;;  %v1090_v61 = vpop.eup %1089 }
  0xa3   : > { %v441_v57 = vadd.f32 %v440_v50, %v439_v2  ;;  %v447_v58 = vrot.slane %v446_v54, 4  ;;  %v547_v59 = vsel %vm414_vm0, %v538_v51, 0.0  ;;  %v603_v10 = vmul.f32 %v1090_v61, %v1696_v34 }
  0xa4   : > { %v499_v62 = vrot.slane %v492_v53, %v498_v43  ;;  %v542_v63 = vadd.f32 %v541_v55, %v540_v52  ;;  %v548_v3 = vrot.slane %v547_v59, 4  ;;  %v598_v4 = vsel %vm597_vm8, %v1692_v27, %v596_v56 }
  0xa5   : > { %v442_v7 = vrot.slane %v441_v57, 2  ;;  %v448_v8 = vadd.f32 %v447_v58, %v446_v54  ;;  %v601_v9 = vsel %vm599_vm9, %v600_v46, %v598_v4  ;;  %v605_v23 = vsel %vm604_vm10, %v1696_v34, %v603_v10 }
  0xa6   : > { %v506_v14 = vrot.slane %v499_v62, %v498_v43  ;;  %v543_v15 = vrot.slane %v542_v63, 2  ;;  %v549_v16 = vadd.f32 %v548_v3, %v547_v59  ;;  %v609_v17 = vmax.f32 %v601_v9, 1e-12 }
  0xa7   : > { %v443_v21 = vadd.f32 %v442_v7, %v441_v57  ;;  %v449_v22 = vrot.slane %v448_v8, 2  ;;  %v608_v26 = vsel %vm606_vm12, %v607_v60, %v605_v23 }
  0xa8   : > { %511 = vst.msk [vmem:[%s388_s18] sm:$0x3] %vm1701_vm6, %v506_v14  ;;  %v544_v24 = vadd.f32 %v543_v15, %v542_v63  ;;  %v550_v25 = vrot.slane %v549_v16, 2  ;;  %1091 = vrcp.f32 %v609_v17  ;;  %v610_v30 = vmax.f32 %v608_v26, 1e-12 }
  0xa9   : > { %v444_v27 = vrot.slane %v443_v21, 1  ;;  %v450_v28 = vadd.f32 %v449_v22, %v448_v8 }
  0xaa   : > { %1202 = shalt.err (!%p1199_p13)
}
  0xab   : > { %s1203_s27 = scalar_lea.hbm %s1739_s14, 32  ;;  %s1207_s28 = scalar_lea.hbm %s1919_s4, 64 }
  0xac   : > { %p1204_p7 = scmp.ne.s32.totalorder %s1739_s14, %s1203_s27  ;;  %p1208_p5 = scmp.lt.u32.totalorder %s1739_s14, %s1919_s4 }
  0xad   : > { %p1209_p2 = scmp.lt.u32.totalorder %s1207_s28, %s1203_s27  ;;  %p1211_p0 = scmp.lt.u32.totalorder %s1203_s27, %s1739_s14 }
  0xae   : > { %p1205_p1 = pnand %p1204_p7, %p1954_p6 }
  0xaf   : > { %p1210_p3 = por %p1209_p2, %p1208_p5 }
  0xb0   : > { %p1206_p11 = pneg %p1205_p1 }
  0xb1   : > { %p1212_p8 = por %p1211_p0, %p1210_p3 }
  0xb3   : > { %p1213_p9 = pnand %p1212_p8, %p1206_p11 }
  0xb5   : > { %1216 = shalt.err (!%p1213_p9)
}
  0xb6   : > { %995 = dma.vmem_to_hbm [thread:$0]  (%p1954_p6), %s1731_s19, 32, %s1739_s14, %s1750_s8   ;;  %v545_v1 = vrot.slane %v544_v24, 1  ;;  %v551_v31 = vadd.f32 %v550_v25, %v549_v16  ;;  %v445_v5 = vadd.f32 %v444_v27, %v443_v21  ;;  %v451_v32 = vrot.slane %v450_v28, 1  ;;  %v1092_v39 = vpop.eup %1091 }
  0xb7   : > { %1093 = vrcp.f32 %v610_v30  ;;  %s402_s9 = scalar_lea.vmem [#allocation12], %s962_s15  ;;  %v612_v40 = vmul.f32 %v1092_v39, %v1644_v6  ;;  %v615_v41 = vmul.f32 %v1092_v39, %v1654_v11  ;;  %v617_v42 = vmul.f32 %v1092_v39, %v1656_v12  ;;  %s987_s19 = sshll.u32 %s1359_s24, 10 }
  0xb8   : > { %v546_v33 = vadd.f32 %v545_v1, %v544_v24  ;;  %v552_v34 = vrot.slane %v551_v31, 1  ;;  %v452_v35 = vadd.f32 %v451_v32, %v450_v28  ;;  %s708_s18 = sshll.u32 %s402_s9, 4  ;;  %v619_v43 = vmul.f32 %v1092_v39, %v1658_v13  ;;  %s1790_s20 = scalar_lea.hbm %s1921_s6, %s987_s19  ;;  %s1781_s18 = int_to_ptr.vmem [resolvable:$true] %s708_s18 }
  0xb9   : > { %621 = vst [vmem:[%s402_s9] sm:$0xff] %v612_v40  ;;  %623 = vst [vmem:[%s402_s9 + $0x10] sm:$0xff] %v615_v41  ;;  %s381_s12 = scalar_lea.vmem [#allocation8], %s1618_s29  ;;  %s984_s23 = sshll.u32 %s1359_s24, 7 }
  0xba   : > { %v553_v36 = vadd.f32 %v552_v34, %v551_v31  ;;  %v455_v37 = vcombine.low %v445_v5, %v452_v35  ;;  %625 = vst [vmem:[%s402_s9 + $0x20] sm:$0xff] %v617_v42  ;;  %627 = vst [vmem:[%s402_s9 + $0x30] sm:$0xff] %v619_v43  ;;  %s1795_s14 = sshll.u32 %s381_s12, 4  ;;  %s645_s13 = scalar_lea.sflag [#allocation13], %s1615_s11  ;;  %s1824_s14 = int_to_ptr.vmem [resolvable:$true] %s1795_s14 }
  0xbb   : > { %s1217_s7 = scalar_lea.vmem %s1781_s18, 1024  ;;  %s1377_s21 = smov [#allocation12]  }
  0xbc   : > { %v556_v38 = vcombine.low %v546_v33, %v553_v36  ;;  %1095 = vrcp.f32 %v455_v37  ;;  %p1218_p12 = scmp.ne.s32.totalorder %s1781_s18, %s1217_s7  ;;  %s1221_s27 = sshll.u32 %s1377_s21, 4  ;;  %s1222_s27 = int_to_ptr.vmem [resolvable:$false] %s1221_s27 }
  0xbd   : > { %s1223_s17 = scalar_lea.vmem %s1222_s27, 2048  ;;  %p1224_p13 = scmp.lt.s32.totalorder %s1781_s18, %s1222_s27 }
  0xbe   : > { %1097 = vrcp.f32 %v556_v38  ;;  %p1219_p4 = pnand %p1218_p12, %p1954_p6  ;;  %p1225_p7 = scmp.lt.s32.totalorder %s1223_s17, %s1217_s7 }
  0xc0   : > { %p1220_p10 = pneg %p1219_p4  ;;  %p1226_p1 = por %p1225_p7, %p1224_p13 }
  0xc1   : > { %v1094_v45 = vpop.eup %1093 }
  0xc2   : > { %v614_v6 = vmul.f32 %v1094_v45, %v1664_v18  ;;  %v616_v11 = vmul.f32 %v1094_v45, %v1666_v19  ;;  %v618_v12 = vmul.f32 %v1094_v45, %v1668_v20  ;;  %v620_v13 = vmul.f32 %v1094_v45, %v1676_v29  ;;  %p1227_p11 = pnand %p1226_p1, %p1220_p10 }
  0xc4   : > { %622 = vst [vmem:[%s402_s9 + $0x8] sm:$0xff] %v614_v6  ;;  %624 = vst [vmem:[%s402_s9 + $0x18] sm:$0xff] %v616_v11 }
  0xc5   : > { %626 = vst [vmem:[%s402_s9 + $0x28] sm:$0xff] %v618_v12  ;;  %628 = vst [vmem:[%s402_s9 + $0x38] sm:$0xff] %v620_v13 }
  0xc6   : > { %1230 = shalt.err (!%p1227_p11)
}
  0xc7   : > { %s1231_s26 = scalar_lea.hbm %s1790_s20, 1024  ;;  %s1235_s30 = scalar_lea.hbm %s1921_s6, 2048 }
  0xc8   : > { %p1232_p5 = scmp.ne.s32.totalorder %s1790_s20, %s1231_s26  ;;  %p1236_p0 = scmp.lt.u32.totalorder %s1790_s20, %s1921_s6 }
  0xc9   : > { %p1237_p8 = scmp.lt.u32.totalorder %s1235_s30, %s1231_s26  ;;  %p1239_p12 = scmp.lt.u32.totalorder %s1231_s26, %s1790_s20 }
  0xca   : > { %p1233_p2 = pnand %p1232_p5, %p1954_p6 }
  0xcb   : > { %p1238_p9 = por %p1237_p8, %p1236_p0 }
  0xcc   : > { %p1234_p3 = pneg %p1233_p2 }
  0xcd   : > { %p1240_p4 = por %p1239_p12, %p1238_p9 }
  0xcf   : > { %p1241_p10 = pnand %p1240_p4, %p1234_p3 }
  0xd1   : > { %1244 = shalt.err (!%p1241_p10)
}
  0xd2   : > { %s1378_s15 = smov 256   ;;  %s1379_s1 = smov 16   ;;  %v1096_v18 = vpop.eup %1095 }
  0xd3   : > { %997 = dma.vmem_to_hbm [thread:$0]  (%p1954_p6), %s1781_s18, 1024, %s1790_s20, %s645_s13, %s1378_s15, %s1378_s15, %s1379_s1   ;;  %v1098_v19 = vpop.eup %1097  ;;  %v458_v20 = vmul.f32 %v1096_v18, %v1707_v44 }
  0xd4   : > { %s395_s7 = scalar_lea.vmem [#allocation11], %s1618_s29  ;;  %s1832_s26 = scalar_lea.hbm %s1918_s3, %s984_s23  ;;  %v559_v29 = vmul.f32 %v1098_v19, %v1712_v47 }
  0xd5   : > { %s693_s21 = sshll.u32 %s395_s7, 4  ;;  %s1842_s13 = scalar_lea.hbm %s1920_s5, %s984_s23  ;;  %459 = vst [vmem:[%s381_s12] sm:$0xff] %v458_v20  ;;  %s1835_s21 = int_to_ptr.vmem [resolvable:$true] %s693_s21 }
  0xd6   : > { %560 = vst [vmem:[%s395_s7] sm:$0xff] %v559_v29  ;;  %s630_s28 = scalar_lea.sflag [#allocation4], %s1615_s11  ;;  %s1245_s16 = scalar_lea.vmem %s1824_s14, 128 }
  0xd7   : > { %p1246_p13 = scmp.ne.s32.totalorder %s1824_s14, %s1245_s16  ;;  %s1380_s30 = smov [#allocation8]  }
  0xd8   : > { %s1249_s9 = sshll.u32 %s1380_s30, 4  ;;  %s1250_s9 = int_to_ptr.vmem [resolvable:$false] %s1249_s9 }
  0xd9   : > { %p1247_p7 = pnand %p1246_p13, %p1954_p6  ;;  %s1251_s19 = scalar_lea.vmem %s1250_s9, 256 }
  0xda   : > { %p1252_p11 = scmp.lt.s32.totalorder %s1824_s14, %s1250_s9  ;;  %p1253_p5 = scmp.lt.s32.totalorder %s1251_s19, %s1245_s16 }
  0xdb   : > { %p1248_p1 = pneg %p1247_p7 }
  0xdc   : > { %p1254_p2 = por %p1253_p5, %p1252_p11 }
  0xde   : > { %p1255_p3 = pnand %p1254_p2, %p1248_p1 }
  0xe0   : > { %1258 = shalt.err (!%p1255_p3)
}
  0xe1   : > { %s1259_s24 = scalar_lea.hbm %s1832_s26, 128  ;;  %s1263_s12 = scalar_lea.hbm %s1918_s3, 256 }
  0xe2   : > { %p1260_p0 = scmp.ne.s32.totalorder %s1832_s26, %s1259_s24  ;;  %p1264_p12 = scmp.lt.u32.totalorder %s1832_s26, %s1918_s3 }
  0xe3   : > { %p1265_p4 = scmp.lt.u32.totalorder %s1263_s12, %s1259_s24  ;;  %p1267_p13 = scmp.lt.u32.totalorder %s1259_s24, %s1832_s26 }
  0xe4   : > { %p1261_p8 = pnand %p1260_p0, %p1954_p6 }
  0xe5   : > { %p1266_p10 = por %p1265_p4, %p1264_p12 }
  0xe6   : > { %p1262_p9 = pneg %p1261_p8 }
  0xe7   : > { %p1268_p7 = por %p1267_p13, %p1266_p10 }
  0xe9   : > { %p1269_p1 = pnand %p1268_p7, %p1262_p9 }
  0xeb   : > { %1272 = shalt.err (!%p1269_p1)
}
  0xec   : > { %994 = dma.vmem_to_hbm [thread:$0]  (%p1954_p6), %s1824_s14, 128, %s1832_s26, %s630_s28  }
  0xed   : > { %s1273_s1 = scalar_lea.vmem %s1835_s21, 128  ;;  %s1381_s7 = smov [#allocation11]  }
  0xee   : > { %p1274_p11 = scmp.ne.s32.totalorder %s1835_s21, %s1273_s1  ;;  %s1277_s27 = sshll.u32 %s1381_s7, 4  ;;  %s1278_s27 = int_to_ptr.vmem [resolvable:$false] %s1277_s27 }
  0xef   : > { %s1279_s17 = scalar_lea.vmem %s1278_s27, 256  ;;  %p1280_p3 = scmp.lt.s32.totalorder %s1835_s21, %s1278_s27 }
  0xf0   : > { %p1275_p5 = pnand %p1274_p11, %p1954_p6  ;;  %p1281_p0 = scmp.lt.s32.totalorder %s1279_s17, %s1273_s1 }
  0xf2   : > { %p1276_p2 = pneg %p1275_p5  ;;  %p1282_p8 = por %p1281_p0, %p1280_p3 }
  0xf4   : > { %p1283_p9 = pnand %p1282_p8, %p1276_p2 }
  0xf6   : > { %1286 = shalt.err (!%p1283_p9)
}
  0xf7   : > { %s1287_s14 = scalar_lea.hbm %s1842_s13, 128  ;;  %s1291_s20 = scalar_lea.hbm %s1920_s5, 256 }
  0xf8   : > { %p1288_p12 = scmp.ne.s32.totalorder %s1842_s13, %s1287_s14  ;;  %p1292_p13 = scmp.lt.u32.totalorder %s1842_s13, %s1920_s5 }
  0xf9   : > { %p1293_p7 = scmp.lt.u32.totalorder %s1291_s20, %s1287_s14  ;;  %p1295_p11 = scmp.lt.u32.totalorder %s1287_s14, %s1842_s13 }
  0xfa   : > { %p1289_p4 = pnand %p1288_p12, %p1954_p6 }
  0xfb   : > { %p1294_p1 = por %p1293_p7, %p1292_p13 }
  0xfc   : > { %p1290_p10 = pneg %p1289_p4 }
  0xfd   : > { %p1296_p5 = por %p1295_p11, %p1294_p1 }
  0xff   : > { %p1297_p2 = pnand %p1296_p5, %p1290_p10 }
 0x101   : > { %1300 = shalt.err (!%p1297_p2)
}
 0x102   : > { %996 = dma.vmem_to_hbm [thread:$0]  (%p1954_p6), %s1835_s21, 128, %s1842_s13, %s1750_s8  }
 0x103 PF: > { %s1955_s30 = sld [smem:[#allocation19_spill]]  ;;  %s1956_s9 = sld [smem:[#allocation24_spill]] }
 0x104   : > { %s1957_s19 = sld [smem:[#allocation21_spill]] }
 0x109   : > { %s723_s24 = sand.u32 1, %s1955_s30   ;;  %p1958_p3 = scmp.ne.s32.totalorder %s1956_s9, 0 }
 0x10a   : > { %p1959_p0 = scmp.ge.s32.totalorder %s1957_s19, 2  ;;  %s724_s11 = scalar_lea.sflag [#allocation4], %s723_s24 }
 0x10c   : > { %p1013_p8 = pnand %p1959_p0, %p1958_p3 }
 0x10e   : > { %1334 = dma.done.wait (!%p1013_p8), %s724_s11, 128  }
 0x10f   : > { %1336 = vsyncadd (!%p1013_p8), %s724_s11, 4294967168  ;;  %s1960_s29 = sadd.s32 4294967294, %s1957_s19  }
 0x110   : > { %s732_s12 = sand.u32 1, %s1960_s29  }
 0x111   : > { %s733_s23 = scalar_lea.sflag [#allocation10], %s732_s12 }
 0x112   : > { %1338 = dma.done.wait (!%p1013_p8), %s733_s23, 160  }
 0x113   : > { %1340 = vsyncadd (!%p1013_p8), %s733_s23, 4294967136  ;;  %s751_s10 = scalar_lea.sflag [#allocation13], %s723_s24 }
 0x114   : > { %1342 = dma.done.wait (!%p1013_p8), %s751_s10, 1024  }
 0x115   : > { %1344 = vsyncadd (!%p1013_p8), %s751_s10, 4294966272  ;;  %s32_s26 = sadd.s32 1, %s1957_s19   ;;  %s1961_s8 = sld [smem:[#allocation20_spill]] }
 0x116   : > { %p29_p6 = scmp.ge.s32.totalorder %s32_s26, 4   ;;  %s1962_s23 = sld [smem:[#allocation23_spill]] }
 0x117   : > { %s1963_s13 = sld [smem:[#allocation22_spill]]  ;;  %s1964_s21 = smov %s1351_s22 }
 0x118   : > { %s1966_s24 = smov %s1363_s25  ;;  %31 = sbr.rel (!%p29_p6) target bundleno = 14 (0xe), region = 150 }
 0x11b   : > { %s1965_s22 = smov %s1961_s8 }
 0x11d   : > { %s1967_s25 = smov %s1963_s13 }
 0x11f   :  { %756 = vsyncpa [#allocation3], 1 }
 0x120   :  { %758 = vsyncpa [#allocation3 + $0x1], 1 }
 0x121   :  { %759 = vsyncpa [#allocation6], 1 }
 0x122   :  { %761 = vsyncpa [#allocation6 + $0x1], 1 }
 0x123   :  { %762 = vsyncpa [#allocation4], 1 }
 0x124   :  { %764 = vsyncpa [#allocation4 + $0x1], 1 }
 0x125   :  { %765 = vsyncpa [#allocation10], 1 }
 0x126   :  { %767 = vsyncpa [#allocation10 + $0x1], 1 }
 0x127   :  { %768 = vsyncpa [#allocation13], 1 }
 0x128   :  { %770 = vsyncpa [#allocation13 + $0x1], 1 }

</bundles_post_ra>
